<compile_context>
chip_gen: v7x
topology: tpu7x:2x2x1
jax: 0.10.0
libtpu: 0.0.40
codegen_flags: <defaults>
</compile_context>

<pallas_src>
import functools

import jax
import jax.numpy as jnp
from jax.experimental import pallas as pl
from jax.experimental.pallas import tpu as pltpu


def _round_up(x: int, m: int) -> int:
    return (x + m - 1) // m * m


def _aux_skip_kernel(x_ref, w_ref, shift_ref, o_ref, *, precision):
    # x_ref / o_ref: (b_n, C, t_hw) tile; w_ref: (C_out, C_in) f32; shift_ref: (C, 1) f32
    w = w_ref[...]
    shift = shift_ref[...]
    b_n = x_ref.shape[0]
    for n in range(b_n):                         # static unroll; b_n is capped in wrapper
        xn = x_ref[n].astype(jnp.float32)        # (C, t_hw): per-tile upcast on the VPU
        h = jnp.maximum(xn, 0.0)                 # ReLU
        y = jnp.dot(w, h,                        # 1x1 conv == (C_out,C_in)@(C_in,t_hw)
                    preferred_element_type=jnp.float32,
                    precision=precision)
        o_ref[n] = (xn + y + shift).astype(o_ref.dtype)   # identity skip + conv + BN shift


def _tpu_mem_params():
    """Generation-aware block target / VMEM cap / minimum grid steps."""
    try:
        vmem = int(pltpu.get_tpu_info().vmem_capacity_bytes)
    except Exception:
        vmem = 64 << 20  # conservative fallback (v7x-sized VMEM)
    if vmem <= (64 << 20):
        # v7x-class: 64 MiB VMEM per TC, 2 TensorCores -> keep >=4 steps per core.
        return {"target_bytes": 4 << 20, "vmem_cap": 48 << 20, "min_steps": 8}
    # v5e / v6e: 128 MiB VMEM, single TensorCore -> >=4 steps is enough for overlap.
    return {"target_bytes": 8 << 20, "vmem_cap": 100 << 20, "min_steps": 4}


def _choose_tiles(N, C, HW, itemsize, *, target_bytes, min_steps, max_bn=16):
    """Pick (b_n, t_hw): images per block and a lane-dense H*W tile."""
    sub = max(8, 32 // itemsize)          # sublane granularity for this dtype
    c_pad = _round_up(C, sub)

    # H*W tile: lane-dense (multiple of 128) divisor of HW when possible.
    t_hw = HW
    if HW % 128 == 0:
        while c_pad * _round_up(t_hw, 128) * itemsize > target_bytes and t_hw % 256 == 0:
            t_hw //= 2
    # else: full-extent last dim (allowed by Mosaic); batching still amortises stores.

    def block_bytes(bn, t):
        return bn * c_pad * _round_up(t, 128) * itemsize

    # Batch block: largest divisor of N (<= max_bn) keeping the block near target.
    b_n = 1
    for d in sorted(d for d in range(1, N + 1) if N % d == 0):
        if d <= max_bn and block_bytes(d, t_hw) <= target_bytes:
            b_n = d

    # Keep enough grid steps for DMA/compute overlap (and megacore sharding on v7x).
    def steps(bn, t):
        return (N // bn) * (HW // t)

    while steps(b_n, t_hw) < min_steps:
        if b_n > 1:
            smaller = [d for d in range(1, b_n) if N % d == 0]
            b_n = max(smaller) if smaller else 1
        elif t_hw % 256 == 0:
            t_hw //= 2
        else:
            break
    return b_n, t_hw, c_pad


def aux_network_skip_connection(
    x_nchw,
    conv_w,
    bn_gamma,
    bn_beta,
    bn_running_mean=None,
    bn_running_var=None,
    *,
    eps: float = 1e-5,
    precision=None,          # matmul precision; None == DEFAULT (HBM-bound kernel)
    donate_x: bool = False,  # alias x's HBM buffer to the output if the caller permits
):
    """forward(x) = x + BN(Conv1x1(ReLU(x))) — stride=1 AuxilaryNetworkSkipConnection.

    x_nchw: (N, C, H, W) in its native dtype (f32 or bf16).  conv_w: (C, C, 1, 1).
    BN is eval-mode; it is folded into the conv weight (scale) and a per-channel shift.
    The output dtype matches the input dtype.
    """
    N, C, H, W = x_nchw.shape
    HW = H * W
    itemsize = jnp.dtype(x_nchw.dtype).itemsize

    if bn_running_mean is None:
        bn_running_mean = jnp.zeros((C,), jnp.float32)
    if bn_running_var is None:
        bn_running_var = jnp.ones((C,), jnp.float32)

    # Fold eval-mode BN into the conv:  BN(Wx) = scale*(Wx) + shift
    scale = (bn_gamma.astype(jnp.float32) /
             jnp.sqrt(bn_running_var.astype(jnp.float32) + eps))                 # (C,)
    shift = (bn_beta.astype(jnp.float32)
             - bn_running_mean.astype(jnp.float32) * scale).reshape(C, 1)        # (C, 1)
    w_scaled = conv_w.reshape(C, C).astype(jnp.float32) * scale[:, None]         # (C_out, C_in)

    x3 = x_nchw.reshape(N, C, HW)    # free, contiguous reshape; native dtype (no cast pass)

    params = _tpu_mem_params()
    b_n, t_hw, c_pad = _choose_tiles(
        N, C, HW, itemsize,
        target_bytes=params["target_bytes"], min_steps=params["min_steps"])
    grid = (N // b_n, HW // t_hw)

    # VMEM budget: double-buffered in/out blocks (sublane-padded), resident
    # (double-buffered) weight/shift, and f32 intermediates, plus margin.
    t_pad = _round_up(t_hw, 128)
    io_block = b_n * c_pad * t_pad * itemsize
    f32_block = b_n * c_pad * t_pad * 4
    w_bytes = _round_up(C, 8) * _round_up(C, 128) * 4
    s_bytes = 8 * 128 * 4
    vmem_needed = 4 * io_block + 3 * f32_block + 2 * (w_bytes + s_bytes) + (4 << 20)
    vmem_limit = int(min(max(vmem_needed, 16 << 20), params["vmem_cap"]))

    kernel = functools.partial(_aux_skip_kernel, precision=precision)

    out3 = pl.pallas_call(
        kernel,
        out_shape=jax.ShapeDtypeStruct((N, C, HW), x_nchw.dtype),
        grid_spec=pltpu.PrefetchScalarGridSpec(
            num_scalar_prefetch=0,
            grid=grid,
            in_specs=[
                pl.BlockSpec((b_n, C, t_hw), lambda i, j: (i, 0, j)),   # x block
                pl.BlockSpec((C, C), lambda i, j: (0, 0)),              # folded conv weight
                pl.BlockSpec((C, 1), lambda i, j: (0, 0)),              # BN shift
            ],
            out_specs=pl.BlockSpec((b_n, C, t_hw), lambda i, j: (i, 0, j)),
        ),
        compiler_params=pltpu.CompilerParams(
            dimension_semantics=("parallel", "parallel"),
            vmem_limit_bytes=vmem_limit,
        ),
        input_output_aliases=({0: 0} if donate_x else {}),
    )(x3, w_scaled, shift)

    return out3.reshape(N, C, H, W)


if __name__ == "__main__":
    key = jax.random.PRNGKey(0)
    k1, k2, k3, k4, k5, k6 = jax.random.split(key, 6)

    N, C, H, W = 2, 4, 16, 16
    eps = 1e-5
    x = jax.random.normal(k1, (N, C, H, W), dtype=jnp.float32)
    conv_w = 0.1 * jax.random.normal(k2, (C, C, 1, 1), dtype=jnp.float32)
    bn_gamma = 1.0 + 0.1 * jax.random.normal(k3, (C,), dtype=jnp.float32)
    bn_beta = 0.1 * jax.random.normal(k4, (C,), dtype=jnp.float32)
    # Non-trivial running stats so the BN fold (scale AND shift) is actually exercised.
    bn_running_mean = 0.05 * jax.random.normal(k5, (C,), dtype=jnp.float32)
    bn_running_var = 1.0 + 0.2 * jax.random.uniform(k6, (C,), dtype=jnp.float32)

    out = aux_network_skip_connection(
        x, conv_w, bn_gamma, bn_beta, bn_running_mean, bn_running_var, eps=eps)
    out = jax.block_until_ready(out)

    # Pure-JAX reference of the same forward semantics (NCHW-native, f32).
    scale_ref = bn_gamma / jnp.sqrt(bn_running_var + eps)
    shift_ref = bn_beta - bn_running_mean * scale_ref
    w_ref = conv_w.reshape(C, C) * scale_ref[:, None]
    x3 = x.reshape(N, C, H * W)
    y_ref = jnp.einsum("oi,nif->nof", w_ref, jnp.maximum(x3, 0.0),
                       precision=jax.lax.Precision.HIGHEST) + shift_ref[None, :, None]
    ref = (x3 + y_ref).reshape(N, C, H, W)

    assert out.shape == (N, C, H, W) and out.dtype == x.dtype
    # DEFAULT matmul precision (bf16 MXU passes) vs f32 reference -> loose tolerance.
    assert jnp.allclose(out, ref, atol=1e-2, rtol=1e-2), "mismatch vs reference"
    print("KERNEL_OK")
</pallas_src>

<mosaic_0001>
module attributes {stable_mosaic.version = 11 : i64} {
  func.func @_aux_skip_kernel(%arg0: i32, %arg1: i32, %arg2: memref<1x4x128xf32, #tpu.memory_space<vmem>>, %arg3: memref<4x4xf32, #tpu.memory_space<vmem>>, %arg4: memref<4x1xf32, #tpu.memory_space<vmem>>, %arg5: memref<1x4x128xf32, #tpu.memory_space<vmem>>) attributes {dimension_semantics = [#tpu.dimension_semantics<parallel>, #tpu.dimension_semantics<parallel>], iteration_bounds = array<i64: 2, 2>, scalar_prefetch = 0 : i64, scratch_operands = 0 : i64, tpu.core_type = #tpu.core_type<tc>, window_params = [{transform_indices = @transform_0, window_bounds = array<i64: 1, 4, 128>}, {pipeline_mode = #tpu.pipeline_mode<synchronous>, transform_indices = @transform_1, window_bounds = array<i64: 4, 4>}, {pipeline_mode = #tpu.pipeline_mode<synchronous>, transform_indices = @transform_2, window_bounds = array<i64: 4, 1>}, {transform_indices = @transform_3, window_bounds = array<i64: 1, 4, 128>}]} {
    %c0 = arith.constant 0 : index
    %c0_0 = arith.constant 0 : index
    %0 = vector.load %arg3[%c0, %c0_0] : memref<4x4xf32, #tpu.memory_space<vmem>>, vector<4x4xf32>
    %c0_1 = arith.constant 0 : index
    %c0_2 = arith.constant 0 : index
    %1 = vector.load %arg4[%c0_1, %c0_2] : memref<4x1xf32, #tpu.memory_space<vmem>>, vector<4x1xf32>
    %c0_3 = arith.constant 0 : index
    %c0_4 = arith.constant 0 : index
    %c0_5 = arith.constant 0 : index
    %2 = vector.load %arg2[%c0_3, %c0_4, %c0_5] : memref<1x4x128xf32, #tpu.memory_space<vmem>>, vector<1x4x128xf32>
    %3 = vector.shape_cast %2 : vector<1x4x128xf32> to vector<4x128xf32>
    %cst = arith.constant 0.000000e+00 : f32
    %4 = vector.broadcast %cst : f32 to vector<4x128xf32>
    %5 = arith.maximumf %3, %4 : vector<4x128xf32>
    %cst_6 = arith.constant dense<0.000000e+00> : vector<4x128xf32>
    %6 = tpu.matmul %0, %5, %cst_6 {dimension_numbers = #tpu.dot_dimension_numbers<[1], [0], [0], [1], [0, 0, 1, 1], [], []>} : vector<4x4xf32>, vector<4x128xf32>, vector<4x128xf32> -> vector<4x128xf32>
    %7 = arith.addf %3, %6 : vector<4x128xf32>
    %8 = vector.broadcast %1 : vector<4x1xf32> to vector<4x128xf32>
    %9 = arith.addf %7, %8 : vector<4x128xf32>
    %c0_7 = arith.constant 0 : index
    %c0_8 = arith.constant 0 : index
    %c0_9 = arith.constant 0 : index
    %10 = vector.load %arg5[%c0_7, %c0_8, %c0_9] : memref<1x4x128xf32, #tpu.memory_space<vmem>>, vector<1x4x128xf32>
    %11 = vector.shape_cast %10 : vector<1x4x128xf32> to vector<4x128xf32>
    %12 = vector.shape_cast %9 : vector<4x128xf32> to vector<1x4x128xf32>
    tpu.vector_store %arg5[%c0_7, %c0_8, %c0_9], %12 {strides = array<i32>} : memref<1x4x128xf32, #tpu.memory_space<vmem>>, vector<1x4x128xf32>,
    return
  }
  func.func @transform_0(%arg0: i32, %arg1: i32) -> (i32, i32, i32) {
    %c0_i32 = arith.constant 0 : i32
    %c0_i32_0 = arith.constant 0 : i32
    return %arg0, %c0_i32, %arg1 : i32, i32, i32
  }
  func.func @transform_1(%arg0: i32, %arg1: i32) -> (i32, i32) {
    %c0_i32 = arith.constant 0 : i32
    %c0_i32_0 = arith.constant 0 : i32
    %c0_i32_1 = arith.constant 0 : i32
    return %c0_i32, %c0_i32_0 : i32, i32
  }
  func.func @transform_2(%arg0: i32, %arg1: i32) -> (i32, i32) {
    %c0_i32 = arith.constant 0 : i32
    %c0_i32_0 = arith.constant 0 : i32
    %c0_i32_1 = arith.constant 0 : i32
    return %c0_i32, %c0_i32_0 : i32, i32
  }
  func.func @transform_3(%arg0: i32, %arg1: i32) -> (i32, i32, i32) {
    %c0_i32 = arith.constant 0 : i32
    %c0_i32_0 = arith.constant 0 : i32
    return %arg0, %c0_i32, %arg1 : i32, i32, i32
  }
}

</mosaic_0001>

<bundles_post_ra>
// kernel: tpu_custom_call.1
= control target key start
LH: loop header
LB: loop body
LE: loop exit
PB: predicated region body
PF: predicated region fallthrough
CT: control target
= control target key end

     0   :  { %8 = vsyncpa [#allocation3], 0  ;;  %s856_s0 = inlined_call_operand.hbm [shape: f32[2,4,256], index: 0, kind: input, shape index: {}]   ;;  %s857_s1 = inlined_call_operand.vmem [shape: f32[4,4], index: 1, kind: input, shape index: {}]   ;;  %s858_s2 = inlined_call_operand.vmem [shape: f32[4,1], index: 2, kind: input, shape index: {}]   ;;  %s859_s3 = inlined_call_operand.hbm [shape: f32[2,4,256], index: 3, kind: output, shape index: {}]  }
   0x1   :  { %10 = vsyncpa [#allocation3 + $0x1], 0 }
   0x2   :  { %11 = vsyncpa [#allocation4], 0 }
   0x3   :  { %13 = vsyncpa [#allocation4 + $0x1], 0  ;;  %s656_s12 = smov 0   ;;  %s658_s13 = smov 0  }
   0x4   :  { %s660_s14 = smov 0   ;;  %s662_s15 = smov 0  }
   0x5   :  { %s664_s16 = smov 0   ;;  %s666_s17 = smov 0  }
   0x6   :  { %s668_s18 = smov 0   ;;  %s670_s19 = smov 0  }
   0x7 LB: > { %s395_s20 = sadd.s32 4294967295, %s629_s19   ;;  %s396_s21 = sadd.s32 4294967294, %s629_s19   ;;  %s629_s19 = sphi %s670_s19, %s19_s19   ;;  %s625_s18 = sphi %s668_s18, %s876_s18   ;;  %s621_s17 = sphi %s666_s17, %s875_s17   ;;  %s617_s16 = sphi %s664_s16, %s874_s16   ;;  %s613_s15 = sphi %s662_s15, %s873_s15   ;;  %s609_s14 = sphi %s660_s14, %s872_s14   ;;  %s605_s13 = sphi %s658_s13, %s871_s13   ;;  %s601_s12 = sphi %s656_s12, %s870_s12  }
   0x8   : > { %s28_s22 = sadd.s32 1, %s621_s17  ;;  %s31_s23 = sadd.s32 1, %s625_s18 }
   0x9   : > { %p29_p0 = scmp.ge.s32.totalorder %s28_s22, 2  ;;  %s40_s24 = sadd.s32 1, %s609_s14 }
   0xa   : > { %p47_p1 = scmp.ne.s32.totalorder %s609_s14, %s605_s13  ;;  %p48_p2 = scmp.eq.s32.totalorder %s629_s19, 0 }
   0xb   : > { %s878_s22 = smov (%p29_p0, %s28_s22), 0  ;;  %s880_s23 = smov (!%p29_p0, %s31_s23), %s625_s18 }
   0xc   : > { %s36_s25 = ssub.s32 %s621_s17, %s878_s22  ;;  %p709_p3 = por %p48_p2, %p47_p1 }
   0xd   : > { %p33_p4 = scmp.ge.s32.totalorder %s880_s23, 2  ;;  %p53_p5 = scmp.ne.s32.totalorder %s605_s13, %s601_s12 }
   0xe   : > { %p54_p6 = scmp.eq.s32.totalorder %s395_s20, 0  ;;  %p121_p7 = scmp.eq.s32.totalorder %s395_s20, 3 }
   0xf   : > { %s882_s23 = smov (%p33_p4, %s880_s23), 0  ;;  %p127_p10 = scmp.eq.s32.totalorder %s396_s21, 3 }
  0x10   : > { %p717_p8 = por %p54_p6, %p53_p5  ;;  %p721_p9 = por %p121_p7, %p47_p1 }
  0x11   : > { %s35_s29 = ssub.s32 %s625_s18, %s882_s23  ;;  %p727_p12 = por %p127_p10, %p53_p5 }
  0x12   : > { %s863_s28 = scalar_select %p721_p9, 1, 0 }
  0x13   : > { %s37_s30 = sor.u32 %s36_s25, %s35_s29  ;;  %p431_p13 = scmp.lt.s32.totalorder %s629_s19, 4 }
  0x14   : > { %p38_p11 = scmp.eq.s32.totalorder %s37_s30, 0  ;;  %s153_s5 = sand.u32 1, %s609_s14  }
  0x15   : > { %s864_s4 = scalar_select %p727_p12, 1, 0 }
  0x16   : > { %s734_s6 = scalar_select %p38_p11, %s609_s14, %s40_s24  }
  0x17   : > { %s399_s7 = sshll.u32 %s153_s5, 2  ;;  %s400_s8 = sshll.u32 %s625_s18, 1 }
  0x18   : > { %s162_s9 = sadd.s32 %s621_s17, %s400_s8  ;;  %s157_s10 = scalar_lea.vmem [#allocation2], %s399_s7 }
  0x19   : > { %s166_s11 = sshll.u32 %s157_s10, 4  ;;  %s401_s20 = sshll.u32 %s162_s9, 6  ;;  %s738_s11 = int_to_ptr.vmem [resolvable:$true] %s166_s11 }
  0x1a   : > { %s743_s29 = scalar_lea.hbm %s856_s0, %s401_s20  ;;  %p747_p0 = pnand %p431_p13, %p709_p3 }
  0x1b   : > { %s154_s30 = scalar_lea.sflag [#allocation3], %s153_s5  ;;  %s501_s7 = scalar_lea.hbm %s743_s29, 64 }
  0x1c   : > { %p502_p4 = scmp.ne.s32.totalorder %s743_s29, %s501_s7  ;;  %p503_p5 = pneg %p747_p0 }
  0x1d   : > { %s506_s9 = scalar_lea.hbm %s856_s0, 256  ;;  %p507_p3 = scmp.lt.u32.totalorder %s743_s29, %s856_s0 }
  0x1e   : > { %p504_p6 = pnand %p503_p5, %p502_p4  ;;  %p508_p10 = scmp.lt.u32.totalorder %s506_s9, %s501_s7 }
  0x1f   : > { %p510_p13 = scmp.lt.u32.totalorder %s501_s7, %s743_s29 }
  0x20   : > { %p505_p7 = pneg %p504_p6  ;;  %p509_p11 = por %p508_p10, %p507_p3 }
  0x22   : > { %p511_p1 = por %p510_p13, %p509_p11 }
  0x24   : > { %p512_p2 = pnand %p511_p1, %p505_p7 }
  0x26   : > { %515 = shalt.err (!%p512_p2)
}
  0x27   : > { %s516_s5 = scalar_lea.vmem %s738_s11, 64  ;;  %s631_s21 = smov [#allocation2]  }
  0x28   : > { %p517_p4 = scmp.ne.s32.totalorder %s738_s11, %s516_s5  ;;  %s521_s25 = sshll.u32 %s631_s21, 4  ;;  %s522_s25 = int_to_ptr.vmem [resolvable:$false] %s521_s25 }
  0x29   : > { %s523_s26 = scalar_lea.vmem %s522_s25, 128  ;;  %p524_p9 = scmp.lt.s32.totalorder %s738_s11, %s522_s25 }
  0x2a   : > { %p519_p6 = pnand %p517_p4, %p503_p5  ;;  %p525_p3 = scmp.lt.s32.totalorder %s523_s26, %s516_s5 }
  0x2c   : > { %p520_p12 = pneg %p519_p6  ;;  %p526_p10 = por %p525_p3, %p524_p9 }
  0x2e   : > { %p527_p11 = pnand %p526_p10, %p520_p12 }
  0x30   : > { %530 = shalt.err (!%p527_p11)
}
  0x31   : > { %426 = dma.hbm_to_vmem [thread:$0]  (!%p747_p0), %s743_s29, 64, %s738_s11, %s154_s30  }
  0x32   : > { %p866_p1 = scmp.lt.s32.totalorder %s629_s19, 5  ;;  %p867_p2 = scmp.ge.s32.totalorder %s629_s19, 1 }
  0x34   : > { %p172_p5 = pnand %p867_p2, %p866_p1 }
  0x35   : > { %s783_s7 = sand.u32 (!%p172_p5), 1, %s605_s13  }
  0x36   : > { %175 = sbr.rel (%p172_p5) target bundleno = 296 (0x128), region = 32  ;;  %s403_s8 = sshll.u32 (!%p172_p5), %s783_s7, 2 }
  0x37   : > { %s178_s9 = scalar_lea.sflag (!%p172_p5), [#allocation3], %s783_s7  ;;  %s181_s10 = scalar_lea.vmem (!%p172_p5), [#allocation2], %s403_s8 }
  0x3d   : > { %592 = dma.done.wait (%p717_p8), %s178_s9, 64  }
  0x3e   : > { %594 = vsyncadd (%p717_p8), %s178_s9, 4294967232  ;;  %v632_v0 = vmov 0.0   ;;  %vm633_vm0 = vmmov 0   ;;  %v634_v1 = vmov 0   ;;  %v206_v2 = vld [vmem:[%s181_s10] sm:$0xf] }
  0x3f   : > { %414 = vmatprep.subr.mxu0 %v632_v0  ;;  %416 = vmatprep.mubr.msk.f32.mxu0 %vm633_vm0, %v632_v0  ;;  %vm212_vm1 = vcmask 1043456   ;;  %v205_v3 = vld [vmem:[%s858_s2] sm:$0xf]  ;;  %v207_v4 = vmax.f32 %v206_v2, 0.0  ;;  %vm208_vm2 = vcmask 31744   ;;  %s408_s27 = sshll.u32 %s617_s16, 1 }
  0x40   : > { %500 = vset.pattern.permute.xlu0 %v634_v1  ;;  %v204_v5 = vld [vmem:[%s857_s1] sm:$0xf]  ;;  %s306_s20 = sadd.s32 %s613_s15, %s408_s27  ;;  %s203_s21 = scalar_lea.vmem [#allocation5], %s403_s8 }
  0x41   : > { %289 = vperm.xlu0 %500, %v205_v3   ;;  %415 = vmatpush3.msk.msra.mxu0 %vm212_vm1, %v207_v4  ;;  %s409_s5 = sshll.u32 %s306_s20, 6  ;;  %s310_s25 = sshll.u32 %s203_s21, 4  ;;  %s804_s25 = int_to_ptr.vmem [resolvable:$true] %s310_s25 }
  0x42   : > { %417 = vmatmul.mubr.msk.f32.vlgmr.msra.gmra.mrb[0].mxu0 %vm208_vm2, %v204_v5  ;;  %s802_s10 = scalar_lea.hbm %s859_s3, %s409_s5  ;;  %s295_s15 = scalar_lea.sflag [#allocation4], %s783_s7 }
  0x43   : > { %s531_s16 = scalar_lea.vmem %s804_s25, 64  ;;  %p868_p9 = scmp.ne.s32.totalorder %s863_s28, 0 }
  0x44   : > { %p532_p8 = scmp.ne.s32.totalorder %s804_s25, %s531_s16  ;;  %s635_s8 = smov [#allocation5]  }
  0x45   : > { %s535_s11 = sshll.u32 %s635_s8, 4  ;;  %s536_s11 = int_to_ptr.vmem [resolvable:$false] %s535_s11 }
  0x46   : > { %p533_p12 = pnand %p532_p8, %p868_p9  ;;  %s537_s29 = scalar_lea.vmem %s536_s11, 128 }
  0x47   : > { %p538_p7 = scmp.lt.s32.totalorder %s804_s25, %s536_s11  ;;  %p539_p13 = scmp.lt.s32.totalorder %s537_s29, %s531_s16 }
  0x48   : > { %p534_p0 = pneg %p533_p12 }
  0x49   : > { %p540_p4 = por %p539_p13, %p538_p7 }
  0x4b   : > { %p541_p6 = pnand %p540_p4, %p534_p0 }
  0xc0   : > { %v290_v7 = vpop.permute.xlu0 %289 }
 0x115   : > { %v282_v6 = vpop.f32.mrb[0].mxu0 }
 0x116   : > { %v286_v8 = vadd.f32 %v282_v6, %v206_v2  ;;  %v418_v9 = vpop.f32.mrb[1].mxu0 }
 0x118   : > { %v292_v10 = vadd.f32 %v290_v7, %v286_v8 }
 0x11a   : > { %293 = vst [vmem:[%s203_s21] sm:$0xf] %v292_v10 }
 0x11b   : > { %544 = shalt.err (!%p541_p6)
}
 0x11c   : > { %s545_s7 = scalar_lea.hbm %s802_s10, 64  ;;  %s549_s27 = scalar_lea.hbm %s859_s3, 256 }
 0x11d   : > { %p546_p3 = scmp.ne.s32.totalorder %s802_s10, %s545_s7  ;;  %p550_p1 = scmp.lt.u32.totalorder %s802_s10, %s859_s3 }
 0x11e   : > { %p551_p2 = scmp.lt.u32.totalorder %s549_s27, %s545_s7  ;;  %p553_p8 = scmp.lt.u32.totalorder %s545_s7, %s802_s10 }
 0x11f   : > { %p547_p10 = pnand %p546_p3, %p868_p9 }
 0x120   : > { %p552_p5 = por %p551_p2, %p550_p1 }
 0x121   : > { %p548_p11 = pneg %p547_p10 }
 0x122   : > { %p554_p12 = por %p553_p8, %p552_p5 }
 0x124   : > { %p555_p0 = pnand %p554_p12, %p548_p11 }
 0x126   : > { %558 = shalt.err (!%p555_p0)
}
 0x127   : > { %421 = dma.vmem_to_hbm [thread:$0]  (%p868_p9), %s804_s25, 64, %s802_s10, %s295_s15  }
 0x128 PF: > { %p432_p7 = scmp.ge.s32.totalorder %s629_s19, 2  ;;  %s322_s21 = sand.u32 1, %s601_s12  }
 0x129   : > { %p869_p13 = scmp.ne.s32.totalorder %s864_s4, 0  ;;  %s323_s26 = scalar_lea.sflag [#allocation4], %s322_s21 }
 0x12b   : > { %p428_p4 = pnand %p432_p7, %p869_p13 }
 0x12d   : > { %596 = dma.done.wait (!%p428_p4), %s323_s26, 64  }
 0x12e   : > { %598 = vsyncadd (!%p428_p4), %s323_s26, 4294967232  ;;  %s19_s19 = sadd.s32 1, %s629_s19   ;;  %s870_s12 = smov %s605_s13 }
 0x12f   : > { %p16_p6 = scmp.ge.s32.totalorder %s19_s19, 6   ;;  %s871_s13 = smov %s609_s14 }
 0x130   : > { %s872_s14 = smov %s734_s6  ;;  %s873_s15 = smov %s621_s17 }
 0x131   : > { %s874_s16 = smov %s625_s18  ;;  %s875_s17 = smov %s878_s22 }
 0x132   : > { %s876_s18 = smov %s882_s23  ;;  %18 = sbr.rel (!%p16_p6) target bundleno = 7 (0x7), region = 77 }
 0x139   :  { %328 = vsyncpa [#allocation3], 1 }
 0x13a   :  { %330 = vsyncpa [#allocation3 + $0x1], 1 }
 0x13b   :  { %331 = vsyncpa [#allocation4], 1 }
 0x13c   :  { %333 = vsyncpa [#allocation4 + $0x1], 1 }

</bundles_post_ra>
